<compile_context>
chip_gen: v5e
topology: v5e:2x2
jax: 0.10.0
libtpu: 0.0.40
codegen_flags: <defaults>
</compile_context>

<pallas_src>
import functools

import jax
import jax.numpy as jnp
from jax.experimental import pallas as pl
from jax.experimental.pallas import tpu as pltpu

LANE = 128       # lane width of a vreg
_TM_MAX = 256    # max batch-tile rows (multiple of 128 and of v6e/v7x MXU 256)


def _round_up(x: int, m: int) -> int:
    return ((x + m - 1) // m) * m


# --------------------------------------------------------------------------
# Kernel
# --------------------------------------------------------------------------
def _mlp_kernel(x_ref, w1_ref, w2_ref, w3_ref, w4_ref, w5_ref, b_ref, o_ref):
    """One batch tile of the fused MLP.

    All feature dims are zero-padded to multiples of 128 lanes; padded lanes
    stay exactly 0 through every layer (zero weight cols + zero bias + ReLU),
    so padding never perturbs the real outputs.
    """
    b = b_ref[...]                         # (8, P_max) f32, VMEM-resident
    h = x_ref[...].astype(jnp.bfloat16)    # (tm, P_in)  bf16 MXU input

    def dense(h_bf16, w_ref, row):
        n = w_ref.shape[1]
        acc = jnp.dot(h_bf16, w_ref[...], preferred_element_type=jnp.float32)
        return acc + b[row:row + 1, :n]    # f32 bias add, broadcast over rows

    h = jnp.maximum(dense(h, w1_ref, 0), 0.0).astype(jnp.bfloat16)
    h = jnp.maximum(dense(h, w2_ref, 1), 0.0).astype(jnp.bfloat16)
    h = jnp.maximum(dense(h, w3_ref, 2), 0.0).astype(jnp.bfloat16)
    h = jnp.maximum(dense(h, w4_ref, 3), 0.0).astype(jnp.bfloat16)
    o_ref[...] = jnp.tanh(dense(h, w5_ref, 4)).astype(o_ref.dtype)


# --------------------------------------------------------------------------
# Parameter packing (lane-dense, bf16 weights, merged bias slab)
# --------------------------------------------------------------------------
def pack_params(params):
    """f32 PyTorch-style params -> padded bf16 weights + stacked f32 biases."""
    ws, bias_rows = [], []
    for i in range(1, 6):
        w = params[f"w{i}"]                    # (fan_in, fan_out) f32
        bvec = params[f"b{i}"].reshape(-1)     # (fan_out,) f32
        fi, fo = w.shape
        pi, po = _round_up(fi, LANE), _round_up(fo, LANE)
        wp = jnp.zeros((pi, po), jnp.float32).at[:fi, :fo].set(w)
        ws.append(wp.astype(jnp.bfloat16))
        bias_rows.append((bvec, po))
    p_max = max(po for _, po in bias_rows)
    b_stack = jnp.zeros((8, p_max), jnp.float32)     # 8 sublanes for alignment
    for i, (bvec, _) in enumerate(bias_rows):
        b_stack = b_stack.at[i, : bvec.shape[0]].set(bvec)
    return tuple(ws), b_stack


# --------------------------------------------------------------------------
# Forward wrapper
# --------------------------------------------------------------------------
@functools.partial(jax.jit, static_argnames=("output_size",))
def neural_net_forward(x, ws, b_stack, *, output_size):
    """x: (batch, input_size) f32 -> (batch, output_size) f32 in (-1, 1)."""
    batch, in_features = x.shape
    p_in = ws[0].shape[0]
    p_out = ws[4].shape[1]

    # Batch tile: multiple of 8, capped at 256 (MXU M-dim on v6e/v7x).
    tm = min(_TM_MAX, _round_up(batch, 8))
    padded_batch = _round_up(batch, tm)
    grid = (padded_batch // tm,)

    # Zero-pad batch rows and feature lanes (lane-dense input slab).
    x_pad = jnp.zeros((padded_batch, p_in), jnp.float32)
    x_pad = x_pad.at[:batch, :in_features].set(x)

    def resident(shape):  # whole array, same block every grid step
        return pl.BlockSpec(shape, lambda i: (0, 0))

    in_specs = (
        [pl.BlockSpec((tm, p_in), lambda i: (i, 0))]
        + [resident(w.shape) for w in ws]
        + [resident(b_stack.shape)]
    )
    out_spec = pl.BlockSpec((tm, p_out), lambda i: (i, 0))

    layer_flops = sum(2 * w.shape[0] * w.shape[1] for w in ws)
    cost = pl.CostEstimate(
        flops=padded_batch * layer_flops,
        transcendentals=padded_batch * p_out,
        bytes_accessed=(
            x_pad.size * 4
            + sum(w.size * 2 for w in ws)
            + b_stack.size * 4
            + padded_batch * p_out * 4
        ),
    )

    out = pl.pallas_call(
        _mlp_kernel,
        out_shape=jax.ShapeDtypeStruct((padded_batch, p_out), jnp.float32),
        grid=grid,
        in_specs=in_specs,
        out_specs=out_spec,
        compiler_params=pltpu.CompilerParams(
            dimension_semantics=("parallel",),   # v7x: shard batch over 2 TCs
        ),
        cost_estimate=cost,
    )(x_pad, *ws, b_stack)

    return out[:batch, :output_size]


# --------------------------------------------------------------------------
# Init + pure-JAX reference (f32, mirrors PyTorch nn.Linear defaults)
# --------------------------------------------------------------------------
def init_params(key, input_size, hidden_size, output_size):
    dims = [
        (input_size, hidden_size),             # fc1
        (hidden_size, hidden_size),            # fc2
        (hidden_size, hidden_size // 2),       # fc3
        (hidden_size // 2, hidden_size // 4),  # fc4
        (hidden_size // 4, output_size),       # fc5
    ]
    params = {}
    for i, (fan_in, fan_out) in enumerate(dims, start=1):
        key, kw, kb = jax.random.split(key, 3)
        bound = 1.0 / (fan_in ** 0.5)
        params[f"w{i}"] = jax.random.uniform(
            kw, (fan_in, fan_out), jnp.float32, minval=-bound, maxval=bound)
        params[f"b{i}"] = jax.random.uniform(
            kb, (1, fan_out), jnp.float32, minval=-bound, maxval=bound)
    return params


def reference_forward(x, params):
    h = x
    for i in range(1, 5):
        h = jnp.maximum(h @ params[f"w{i}"] + params[f"b{i}"], 0.0)
    return jnp.tanh(h @ params["w5"] + params["b5"])


# --------------------------------------------------------------------------
if __name__ == "__main__":
    key = jax.random.PRNGKey(0)
    batch, input_size, hidden_size, output_size = 8, 32, 32, 8

    key, kx = jax.random.split(key)
    x = jax.random.normal(kx, (batch, input_size), jnp.float32)
    params = init_params(key, input_size, hidden_size, output_size)
    ws, b_stack = pack_params(params)

    # Small-batch path (single tile).
    out = neural_net_forward(x, ws, b_stack, output_size=output_size)
    out = jax.block_until_ready(out)
    ref = reference_forward(x, params)
    assert out.shape == (batch, output_size)
    # bf16 matmul inputs (f32 accumulate) vs full-f32 reference -> loose tol.
    assert jnp.allclose(out, ref, atol=2e-2, rtol=2e-2), float(
        jnp.max(jnp.abs(out - ref)))

    # Larger, non-tile-aligned batch to exercise the pipelined multi-tile path.
    key, kx2 = jax.random.split(key)
    x_big = jax.random.normal(kx2, (300, input_size), jnp.float32)
    out_big = neural_net_forward(x_big, ws, b_stack, output_size=output_size)
    out_big = jax.block_until_ready(out_big)
    ref_big = reference_forward(x_big, params)
    assert out_big.shape == (300, output_size)
    assert jnp.allclose(out_big, ref_big, atol=2e-2, rtol=2e-2), float(
        jnp.max(jnp.abs(out_big - ref_big)))

    print("KERNEL_OK")
</pallas_src>

<mosaic_0001>
module attributes {stable_mosaic.version = 11 : i64} {
  func.func @_mlp_kernel(%arg0: i32, %arg1: memref<8x128xf32, #tpu.memory_space<vmem>>, %arg2: memref<128x128xbf16, #tpu.memory_space<vmem>>, %arg3: memref<128x128xbf16, #tpu.memory_space<vmem>>, %arg4: memref<128x128xbf16, #tpu.memory_space<vmem>>, %arg5: memref<128x128xbf16, #tpu.memory_space<vmem>>, %arg6: memref<128x128xbf16, #tpu.memory_space<vmem>>, %arg7: memref<8x128xf32, #tpu.memory_space<vmem>>, %arg8: memref<8x128xf32, #tpu.memory_space<vmem>>) attributes {dimension_semantics = [#tpu.dimension_semantics<parallel>], iteration_bounds = array<i64: 1>, scalar_prefetch = 0 : i64, scratch_operands = 0 : i64, tpu.core_type = #tpu.core_type<tc>, window_params = [{transform_indices = @transform_0, window_bounds = array<i64: 8, 128>}, {pipeline_mode = #tpu.pipeline_mode<synchronous>, transform_indices = @transform_1, window_bounds = array<i64: 128, 128>}, {pipeline_mode = #tpu.pipeline_mode<synchronous>, transform_indices = @transform_2, window_bounds = array<i64: 128, 128>}, {pipeline_mode = #tpu.pipeline_mode<synchronous>, transform_indices = @transform_3, window_bounds = array<i64: 128, 128>}, {pipeline_mode = #tpu.pipeline_mode<synchronous>, transform_indices = @transform_4, window_bounds = array<i64: 128, 128>}, {pipeline_mode = #tpu.pipeline_mode<synchronous>, transform_indices = @transform_5, window_bounds = array<i64: 128, 128>}, {pipeline_mode = #tpu.pipeline_mode<synchronous>, transform_indices = @transform_6, window_bounds = array<i64: 8, 128>}, {transform_indices = @transform_7, window_bounds = array<i64: 8, 128>}]} {
    %c0 = arith.constant 0 : index
    %c0_0 = arith.constant 0 : index
    %0 = vector.load %arg7[%c0, %c0_0] : memref<8x128xf32, #tpu.memory_space<vmem>>, vector<8x128xf32>
    %c0_1 = arith.constant 0 : index
    %c0_2 = arith.constant 0 : index
    %1 = vector.load %arg1[%c0_1, %c0_2] : memref<8x128xf32, #tpu.memory_space<vmem>>, vector<8x128xf32>
    %2 = arith.truncf %1 : vector<8x128xf32> to vector<8x128xbf16>
    %c0_3 = arith.constant 0 : index
    %c0_4 = arith.constant 0 : index
    %3 = vector.load %arg2[%c0_3, %c0_4] : memref<128x128xbf16, #tpu.memory_space<vmem>>, vector<128x128xbf16>
    %cst = arith.constant dense<0.000000e+00> : vector<8x128xf32>
    %4 = tpu.matmul %2, %3, %cst {dimension_numbers = #tpu.dot_dimension_numbers<[1], [0], [0], [1], [0, 0, 1, 1], [], []>} : vector<8x128xbf16>, vector<128x128xbf16>, vector<8x128xf32> -> vector<8x128xf32>
    %5 = vector.extract_strided_slice %0 {offsets = [0, 0], sizes = [1, 128], strides = [1, 1]} : vector<8x128xf32> to vector<1x128xf32>
    %6 = vector.broadcast %5 : vector<1x128xf32> to vector<8x128xf32>
    %7 = arith.addf %4, %6 : vector<8x128xf32>
    %cst_5 = arith.constant 0.000000e+00 : f32
    %8 = vector.broadcast %cst_5 : f32 to vector<8x128xf32>
    %9 = arith.maximumf %7, %8 : vector<8x128xf32>
    %10 = arith.truncf %9 : vector<8x128xf32> to vector<8x128xbf16>
    %c0_6 = arith.constant 0 : index
    %c0_7 = arith.constant 0 : index
    %11 = vector.load %arg3[%c0_6, %c0_7] : memref<128x128xbf16, #tpu.memory_space<vmem>>, vector<128x128xbf16>
    %cst_8 = arith.constant dense<0.000000e+00> : vector<8x128xf32>
    %12 = tpu.matmul %10, %11, %cst_8 {dimension_numbers = #tpu.dot_dimension_numbers<[1], [0], [0], [1], [0, 0, 1, 1], [], []>} : vector<8x128xbf16>, vector<128x128xbf16>, vector<8x128xf32> -> vector<8x128xf32>
    %13 = vector.extract_strided_slice %0 {offsets = [1, 0], sizes = [1, 128], strides = [1, 1]} : vector<8x128xf32> to vector<1x128xf32>
    %14 = vector.broadcast %13 : vector<1x128xf32> to vector<8x128xf32>
    %15 = arith.addf %12, %14 : vector<8x128xf32>
    %cst_9 = arith.constant 0.000000e+00 : f32
    %16 = vector.broadcast %cst_9 : f32 to vector<8x128xf32>
    %17 = arith.maximumf %15, %16 : vector<8x128xf32>
    %18 = arith.truncf %17 : vector<8x128xf32> to vector<8x128xbf16>
    %c0_10 = arith.constant 0 : index
    %c0_11 = arith.constant 0 : index
    %19 = vector.load %arg4[%c0_10, %c0_11] : memref<128x128xbf16, #tpu.memory_space<vmem>>, vector<128x128xbf16>
    %cst_12 = arith.constant dense<0.000000e+00> : vector<8x128xf32>
    %20 = tpu.matmul %18, %19, %cst_12 {dimension_numbers = #tpu.dot_dimension_numbers<[1], [0], [0], [1], [0, 0, 1, 1], [], []>} : vector<8x128xbf16>, vector<128x128xbf16>, vector<8x128xf32> -> vector<8x128xf32>
    %21 = vector.extract_strided_slice %0 {offsets = [2, 0], sizes = [1, 128], strides = [1, 1]} : vector<8x128xf32> to vector<1x128xf32>
    %22 = vector.broadcast %21 : vector<1x128xf32> to vector<8x128xf32>
    %23 = arith.addf %20, %22 : vector<8x128xf32>
    %cst_13 = arith.constant 0.000000e+00 : f32
    %24 = vector.broadcast %cst_13 : f32 to vector<8x128xf32>
    %25 = arith.maximumf %23, %24 : vector<8x128xf32>
    %26 = arith.truncf %25 : vector<8x128xf32> to vector<8x128xbf16>
    %c0_14 = arith.constant 0 : index
    %c0_15 = arith.constant 0 : index
    %27 = vector.load %arg5[%c0_14, %c0_15] : memref<128x128xbf16, #tpu.memory_space<vmem>>, vector<128x128xbf16>
    %cst_16 = arith.constant dense<0.000000e+00> : vector<8x128xf32>
    %28 = tpu.matmul %26, %27, %cst_16 {dimension_numbers = #tpu.dot_dimension_numbers<[1], [0], [0], [1], [0, 0, 1, 1], [], []>} : vector<8x128xbf16>, vector<128x128xbf16>, vector<8x128xf32> -> vector<8x128xf32>
    %29 = vector.extract_strided_slice %0 {offsets = [3, 0], sizes = [1, 128], strides = [1, 1]} : vector<8x128xf32> to vector<1x128xf32>
    %30 = vector.broadcast %29 : vector<1x128xf32> to vector<8x128xf32>
    %31 = arith.addf %28, %30 : vector<8x128xf32>
    %cst_17 = arith.constant 0.000000e+00 : f32
    %32 = vector.broadcast %cst_17 : f32 to vector<8x128xf32>
    %33 = arith.maximumf %31, %32 : vector<8x128xf32>
    %34 = arith.truncf %33 : vector<8x128xf32> to vector<8x128xbf16>
    %c0_18 = arith.constant 0 : index
    %c0_19 = arith.constant 0 : index
    %35 = vector.load %arg6[%c0_18, %c0_19] : memref<128x128xbf16, #tpu.memory_space<vmem>>, vector<128x128xbf16>
    %cst_20 = arith.constant dense<0.000000e+00> : vector<8x128xf32>
    %36 = tpu.matmul %34, %35, %cst_20 {dimension_numbers = #tpu.dot_dimension_numbers<[1], [0], [0], [1], [0, 0, 1, 1], [], []>} : vector<8x128xbf16>, vector<128x128xbf16>, vector<8x128xf32> -> vector<8x128xf32>
    %37 = vector.extract_strided_slice %0 {offsets = [4, 0], sizes = [1, 128], strides = [1, 1]} : vector<8x128xf32> to vector<1x128xf32>
    %38 = vector.broadcast %37 : vector<1x128xf32> to vector<8x128xf32>
    %39 = arith.addf %36, %38 : vector<8x128xf32>
    %40 = math.tanh %39 : vector<8x128xf32>
    %c0_21 = arith.constant 0 : index
    %c0_22 = arith.constant 0 : index
    %41 = vector.load %arg8[%c0_21, %c0_22] : memref<8x128xf32, #tpu.memory_space<vmem>>, vector<8x128xf32>
    tpu.vector_store %arg8[%c0_21, %c0_22], %40 {strides = array<i32>} : memref<8x128xf32, #tpu.memory_space<vmem>>, vector<8x128xf32>,
    return
  }
  func.func @transform_0(%arg0: i32) -> (i32, i32) {
    %c0_i32 = arith.constant 0 : i32
    %c0_i32_0 = arith.constant 0 : i32
    return %arg0, %c0_i32 : i32, i32
  }
  func.func @transform_1(%arg0: i32) -> (i32, i32) {
    %c0_i32 = arith.constant 0 : i32
    %c0_i32_0 = arith.constant 0 : i32
    %c0_i32_1 = arith.constant 0 : i32
    return %c0_i32, %c0_i32_0 : i32, i32
  }
  func.func @transform_2(%arg0: i32) -> (i32, i32) {
    %c0_i32 = arith.constant 0 : i32
    %c0_i32_0 = arith.constant 0 : i32
    %c0_i32_1 = arith.constant 0 : i32
    return %c0_i32, %c0_i32_0 : i32, i32
  }
  func.func @transform_3(%arg0: i32) -> (i32, i32) {
    %c0_i32 = arith.constant 0 : i32
    %c0_i32_0 = arith.constant 0 : i32
    %c0_i32_1 = arith.constant 0 : i32
    return %c0_i32, %c0_i32_0 : i32, i32
  }
  func.func @transform_4(%arg0: i32) -> (i32, i32) {
    %c0_i32 = arith.constant 0 : i32
    %c0_i32_0 = arith.constant 0 : i32
    %c0_i32_1 = arith.constant 0 : i32
    return %c0_i32, %c0_i32_0 : i32, i32
  }
  func.func @transform_5(%arg0: i32) -> (i32, i32) {
    %c0_i32 = arith.constant 0 : i32
    %c0_i32_0 = arith.constant 0 : i32
    %c0_i32_1 = arith.constant 0 : i32
    return %c0_i32, %c0_i32_0 : i32, i32
  }
  func.func @transform_6(%arg0: i32) -> (i32, i32) {
    %c0_i32 = arith.constant 0 : i32
    %c0_i32_0 = arith.constant 0 : i32
    %c0_i32_1 = arith.constant 0 : i32
    return %c0_i32, %c0_i32_0 : i32, i32
  }
  func.func @transform_7(%arg0: i32) -> (i32, i32) {
    %c0_i32 = arith.constant 0 : i32
    %c0_i32_0 = arith.constant 0 : i32
    return %arg0, %c0_i32 : i32, i32
  }
}

</mosaic_0001>

<bundles_post_ra>
// kernel: neural_net_forward.1
= control target key start
LH: loop header
LB: loop body
LE: loop exit
PB: predicated region body
PF: predicated region fallthrough
CT: control target
= control target key end

     0   :  { %12 = vsyncpa [#allocation3], 0  ;;  %s968_s0 = inlined_call_operand.vmem [shape: f32[8,128], index: 0, kind: input, shape index: {}]   ;;  %s969_s1 = inlined_call_operand.hbm [shape: bf16[128,128], index: 1, kind: input, shape index: {}]   ;;  %s970_s2 = inlined_call_operand.hbm [shape: bf16[128,128], index: 2, kind: input, shape index: {}]   ;;  %s971_s3 = inlined_call_operand.hbm [shape: bf16[128,128], index: 3, kind: input, shape index: {}]   ;;  %s972_s4 = inlined_call_operand.hbm [shape: bf16[128,128], index: 4, kind: input, shape index: {}]   ;;  %s973_s5 = inlined_call_operand.hbm [shape: bf16[128,128], index: 5, kind: input, shape index: {}]   ;;  %s974_s6 = inlined_call_operand.vmem [shape: f32[8,128], index: 6, kind: input, shape index: {}]   ;;  %s975_s7 = inlined_call_operand.hbm [shape: f32[8,128], index: 7, kind: output, shape index: {}]  }
   0x1   :  { %13 = vsyncpa [#allocation6], 0 }
   0x2   :  { %14 = vsyncpa [#allocation9], 0 }
   0x3   :  { %15 = vsyncpa [#allocation4], 0  ;;  %s35_s26 = sshll.u32 %s970_s2, 4  ;;  %s889_s27 = smov [#allocation5]   ;;  %s36_s26 = int_to_ptr.hbm [resolvable:$true] %s35_s26 }
   0x4   :  { %s37_s28 = sshll.u32 %s889_s27, 4  ;;  %s61_s8 = sshll.u32 %s972_s4, 4  ;;  %s38_s28 = int_to_ptr.vmem [resolvable:$true] %s37_s28  ;;  %s62_s8 = int_to_ptr.hbm [resolvable:$true] %s61_s8 }
   0x5   :  { %s890_s9 = smov 64   ;;  %s891_s10 = smov 4  }
   0x6   :  { %43 = dma.hbm_to_vmem [thread:$0]  %s36_s26, 1024, %s38_s28, [#allocation6], %s890_s9, %s890_s9, %s891_s10  }
   0x7   :  { %s892_s11 = smov [#allocation8]   ;;  %s22_s15 = sshll.u32 %s969_s1, 4  ;;  %s23_s15 = int_to_ptr.hbm [resolvable:$true] %s22_s15 }
   0x8   :  { %s63_s12 = sshll.u32 %s892_s11, 4  ;;  %s48_s17 = sshll.u32 %s971_s3, 4  ;;  %s64_s12 = int_to_ptr.vmem [resolvable:$true] %s63_s12  ;;  %s49_s17 = int_to_ptr.hbm [resolvable:$true] %s48_s17 }
   0x9   :  { %69 = dma.hbm_to_vmem [thread:$0]  %s62_s8, 1024, %s64_s12, [#allocation9], %s890_s9, %s890_s9, %s891_s10  }
   0xa   :  { %s893_s18 = smov [#allocation2]   ;;  %s894_s4 = smov [#allocation7]  }
   0xb   :  { %s24_s19 = sshll.u32 %s893_s18, 4  ;;  %s50_s20 = sshll.u32 %s894_s4, 4  ;;  %s25_s19 = int_to_ptr.vmem [resolvable:$true] %s24_s19  ;;  %s51_s20 = int_to_ptr.vmem [resolvable:$true] %s50_s20 }
   0xc   :  { %30 = dma.hbm_to_vmem [thread:$0]  %s23_s15, 1024, %s25_s19, [#allocation3], %s890_s9, %s890_s9, %s891_s10  }
   0xd   :  { %s74_s23 = sshll.u32 %s973_s5, 4  ;;  %s895_s1 = smov [#allocation10]   ;;  %s75_s23 = int_to_ptr.hbm [resolvable:$true] %s74_s23 }
   0xe   :  { %56 = dma.hbm_to_vmem [thread:$0]  %s49_s17, 1024, %s51_s20, [#allocation6], %s890_s9, %s890_s9, %s891_s10  }
   0xf   :  { %s76_s24 = sshll.u32 %s895_s1, 4  ;;  %s77_s24 = int_to_ptr.vmem [resolvable:$true] %s76_s24 }
  0x10   :  { %82 = dma.hbm_to_vmem [thread:$0]  %s75_s23, 1024, %s77_s24, [#allocation9], %s890_s9, %s890_s9, %s891_s10  }
  0x11   :  { %881 = dma.done.wait [#allocation3], 1024  }
  0x12   :  { %882 = vsyncadd [#allocation3], 4294966272 }
  0x13   :  { %883 = dma.done.wait [#allocation6], 2048  }
  0x14   :  { %884 = vsyncadd [#allocation6], 4294965248 }
  0x15   :  { %885 = dma.done.wait [#allocation9], 2048  }
  0x16   :  { %886 = vsyncadd [#allocation9], 4294965248  ;;  %v694_v0 = vld [vmem:[#allocation2 + $0x38] sm:$0xff]  ;;  %v693_v1 = vld [vmem:[#allocation2 + $0x30] sm:$0xff]  ;;  %s515_s29 = sshll.u32 %s975_s7, 4  ;;  %s516_s29 = int_to_ptr.hbm [resolvable:$true] %s515_s29 }
  0x17   :  { %173 = vmatpush.bf16.msra.mxu0 %v694_v0  ;;  %v702_v2 = vld [vmem:[#allocation5 + $0x38] sm:$0xff]  ;;  %v701_v3 = vld [vmem:[#allocation5 + $0x30] sm:$0xff]  ;;  %v692_v4 = vld [vmem:[#allocation2 + $0x28] sm:$0xff] }
  0x18   :  { %253 = vmatpush.bf16.msra.mxu1 %v702_v2  ;;  %v700_v5 = vld [vmem:[#allocation5 + $0x28] sm:$0xff]  ;;  %v691_v6 = vld [vmem:[#allocation2 + $0x20] sm:$0xff]  ;;  %v690_v8 = vld [vmem:[#allocation2 + $0x18] sm:$0xff] }
  0x19   :  { %v699_v7 = vld [vmem:[#allocation5 + $0x20] sm:$0xff]  ;;  %v698_v9 = vld [vmem:[#allocation5 + $0x18] sm:$0xff]  ;;  %v689_v10 = vld [vmem:[#allocation2 + $0x10] sm:$0xff] }
  0x1a   :  { %v697_v11 = vld [vmem:[#allocation5 + $0x10] sm:$0xff]  ;;  %v688_v12 = vld [vmem:[#allocation2 + $0x8] sm:$0xff]  ;;  %v687_v13 = vld [vmem:[#allocation2] sm:$0xff] }
  0x1b   :  { %174 = vmatpush.bf16.msra.mxu0 %v693_v1  ;;  %v106_v14 = vld [vmem:[%s968_s0] sm:$0xff]  ;;  %v696_v16 = vld [vmem:[#allocation5 + $0x8] sm:$0xff]  ;;  %v710_v18 = vld [vmem:[#allocation7 + $0x38] sm:$0xff]  ;;  %s896_s0 = smov [#allocation11]  }
  0x1c   :  { %254 = vmatpush.bf16.msra.mxu1 %v701_v3  ;;  %v107_v15 = vpack.c.bf16 %v106_v14, %v106_v14  ;;  %v695_v17 = vld [vmem:[#allocation5] sm:$0xff]  ;;  %333 = vmatpush.bf16.msra.mxu2 %v710_v18  ;;  %v709_v19 = vld [vmem:[#allocation7 + $0x30] sm:$0xff]  ;;  %v708_v20 = vld [vmem:[#allocation7 + $0x28] sm:$0xff] }
  0x1d   :  { %v707_v21 = vld [vmem:[#allocation7 + $0x20] sm:$0xff]  ;;  %v706_v22 = vld [vmem:[#allocation7 + $0x18] sm:$0xff]  ;;  %v705_v24 = vld [vmem:[#allocation7 + $0x10] sm:$0xff] }
  0x1e   :  { %v958_v23 = vld [vmem:[%s974_s6] sm:$0xff]  ;;  %v704_v31 = vld [vmem:[#allocation7 + $0x8] sm:$0xff]  ;;  %v718_v33 = vld [vmem:[#allocation8 + $0x38] sm:$0xff]  ;;  %s513_s6 = sshll.u32 %s896_s0, 4  ;;  %s514_s6 = int_to_ptr.vmem [resolvable:$true] %s513_s6 }
  0x1f   :  { %175 = vmatpush.bf16.msra.mxu0 %v692_v4  ;;  %v124_v25 = vperm.slane %v958_v23, 0  ;;  %v703_v32 = vld [vmem:[#allocation7] sm:$0xff]  ;;  %413 = vmatpush.bf16.msra.mxu3 %v718_v33  ;;  %v717_v34 = vld [vmem:[#allocation8 + $0x30] sm:$0xff]  ;;  %v716_v35 = vld [vmem:[#allocation8 + $0x28] sm:$0xff]  ;;  %v204_v39 = vperm.slane %v958_v23, 1  ;;  %v284_v53 = vperm.slane %v958_v23, 2 }
  0x20   :  { %255 = vmatpush.bf16.msra.mxu1 %v700_v5  ;;  %334 = vmatpush.bf16.msra.mxu2 %v709_v19  ;;  %v715_v36 = vld [vmem:[#allocation8 + $0x20] sm:$0xff]  ;;  %v714_v37 = vld [vmem:[#allocation8 + $0x18] sm:$0xff]  ;;  %v713_v38 = vld [vmem:[#allocation8 + $0x10] sm:$0xff]  ;;  %v364_v61 = vperm.slane %v958_v23, 3  ;;  %v444_v3 = vperm.slane %v958_v23, 4 }
  0x21   :  { %v712_v45 = vld [vmem:[#allocation8 + $0x8] sm:$0xff]  ;;  %v711_v46 = vld [vmem:[#allocation8] sm:$0xff]  ;;  %v726_v47 = vld [vmem:[#allocation10 + $0x38] sm:$0xff] }
  0x22   :  { %v725_v48 = vld [vmem:[#allocation10 + $0x30] sm:$0xff]  ;;  %v724_v49 = vld [vmem:[#allocation10 + $0x28] sm:$0xff]  ;;  %v723_v50 = vld [vmem:[#allocation10 + $0x20] sm:$0xff] }
  0x23   :  { %176 = vmatpush.bf16.msra.mxu0 %v691_v6  ;;  %414 = vmatpush.bf16.msra.mxu3 %v717_v34  ;;  %v722_v51 = vld [vmem:[#allocation10 + $0x18] sm:$0xff]  ;;  %v721_v52 = vld [vmem:[#allocation10 + $0x10] sm:$0xff]  ;;  %v720_v59 = vld [vmem:[#allocation10 + $0x8] sm:$0xff] }
  0x24   :  { %256 = vmatpush.bf16.msra.mxu1 %v699_v7  ;;  %335 = vmatpush.bf16.msra.mxu2 %v708_v20  ;;  %v719_v60 = vld [vmem:[#allocation10] sm:$0xff] }
  0x27   :  { %177 = vmatpush.bf16.msra.mxu0 %v690_v8  ;;  %415 = vmatpush.bf16.msra.mxu3 %v716_v35 }
  0x28   :  { %257 = vmatpush.bf16.msra.mxu1 %v698_v9  ;;  %336 = vmatpush.bf16.msra.mxu2 %v707_v21 }
  0x2b   :  { %178 = vmatpush.bf16.msra.mxu0 %v689_v10  ;;  %416 = vmatpush.bf16.msra.mxu3 %v715_v36 }
  0x2c   :  { %258 = vmatpush.bf16.msra.mxu1 %v697_v11  ;;  %337 = vmatpush.bf16.msra.mxu2 %v706_v22 }
  0x2f   :  { %179 = vmatpush.bf16.msra.mxu0 %v688_v12  ;;  %417 = vmatpush.bf16.msra.mxu3 %v714_v37 }
  0x30   :  { %259 = vmatpush.bf16.msra.mxu1 %v696_v16  ;;  %338 = vmatpush.bf16.msra.mxu2 %v705_v24 }
  0x33   :  { %180 = vmatpush.bf16.msra.mxu0 %v687_v13  ;;  %418 = vmatpush.bf16.msra.mxu3 %v713_v38 }
  0x34   :  { %260 = vmatpush.bf16.msra.mxu1 %v695_v17  ;;  %339 = vmatpush.bf16.msra.mxu2 %v704_v31 }
  0x36   :  { %181 = vmatmul.bf16.vlgmr.msra.gmra.mxu0 %v107_v15 }
  0x37   :  { %419 = vmatpush.bf16.msra.mxu3 %v712_v45  ;;  %493 = vmatpush.bf16.msrb.mxu0 %v726_v47 }
  0x38   :  { %340 = vmatpush.bf16.msra.mxu2 %v703_v32 }
  0x3b   :  { %420 = vmatpush.bf16.msra.mxu3 %v711_v46  ;;  %494 = vmatpush.bf16.msrb.mxu0 %v725_v48 }
  0x3f   :  { %495 = vmatpush.bf16.msrb.mxu0 %v724_v49 }
  0x43   :  { %496 = vmatpush.bf16.msrb.mxu0 %v723_v50 }
  0x47   :  { %497 = vmatpush.bf16.msrb.mxu0 %v722_v51 }
  0x4b   :  { %498 = vmatpush.bf16.msrb.mxu0 %v721_v52 }
  0x4f   :  { %499 = vmatpush.bf16.msrb.mxu0 %v720_v59 }
  0x53   :  { %500 = vmatpush.bf16.msrb.mxu0 %v719_v60 }
  0xb3   :  { %v182_v26 = vpop.f32.mrf.mxu0 }
  0xb4   :  { %v183_v27 = vadd.f32 %v182_v26, %v124_v25 }
  0xb6   :  { %v186_v28 = vmax.f32 %v183_v27, 0.0 }
  0xb8   :  { %v187_v29 = vpack.c.bf16 %v186_v28, %v186_v28 }
  0xba   :  { %261 = vmatmul.bf16.vlgmr.msra.gmra.mxu1 %v187_v29 }
  0xbb   :  { %v184_v30 = vpop.f32.mrf.mxu0 }
 0x137   :  { %v262_v40 = vpop.f32.mrf.mxu1 }
 0x138   :  { %v263_v41 = vadd.f32 %v262_v40, %v204_v39 }
 0x13a   :  { %v266_v42 = vmax.f32 %v263_v41, 0.0 }
 0x13c   :  { %v267_v43 = vpack.c.bf16 %v266_v42, %v266_v42 }
 0x13e   :  { %341 = vmatmul.bf16.vlgmr.msra.gmra.mxu2 %v267_v43 }
 0x13f   :  { %v264_v44 = vpop.f32.mrf.mxu1 }
 0x1c1   :  { %v342_v54 = vpop.f32.mrf.mxu2 }
 0x1c2   :  { %v343_v55 = vadd.f32 %v342_v54, %v284_v53 }
 0x1c4   :  { %v346_v56 = vmax.f32 %v343_v55, 0.0 }
 0x1c6   :  { %v347_v57 = vpack.c.bf16 %v346_v56, %v346_v56 }
 0x1c8   :  { %421 = vmatmul.bf16.vlgmr.msra.gmra.mxu3 %v347_v57 }
 0x1c9   :  { %v344_v58 = vpop.f32.mrf.mxu2 }
 0x24b   :  { %v422_v62 = vpop.f32.mrf.mxu3 }
 0x24c   :  { %v423_v63 = vadd.f32 %v422_v62, %v364_v61 }
 0x24e   :  { %v426_v0 = vmax.f32 %v423_v63, 0.0 }
 0x250   :  { %v427_v1 = vpack.c.bf16 %v426_v0, %v426_v0 }
 0x252   :  { %501 = vmatmul.bf16.vlgmr.msrb.gmra.mxu0 %v427_v1 }
 0x253   :  { %v424_v2 = vpop.f32.mrf.mxu3 }
 0x2cf   :  { %v502_v4 = vpop.f32.mrf.mxu0 }
 0x2d0   :  { %v503_v5 = vadd.f32 %v502_v4, %v444_v3 }
 0x2d2   :  { %735 = vtanh.f32 %v503_v5 }
 0x2d7   :  { %v504_v6 = vpop.f32.mrf.mxu0 }
 0x2d8   :  { %v736_v7 = vpop.eup %735 }
 0x2d9   :  { %507 = vst [vmem:[#allocation11] sm:$0xff] %v736_v7 }
 0x2da   :  { %518 = dma.vmem_to_hbm [thread:$0]  %s514_s6, 128, %s516_s29, [#allocation4]  }
 0x2db   :  { %887 = dma.done.wait [#allocation4], 128  }
 0x2dc   :  { %888 = vsyncadd [#allocation4], 4294967168 }
 0x2dd   :  { %523 = vsyncpa [#allocation3], 1 }
 0x2de   :  { %524 = vsyncpa [#allocation6], 1 }
 0x2df   :  { %525 = vsyncpa [#allocation9], 1 }
 0x2e0   :  { %526 = vsyncpa [#allocation4], 1 }

</bundles_post_ra>
